<compile_context>
chip_gen: v7x
topology: tpu7x:2x2x1
jax: 0.10.0
libtpu: 0.0.40
codegen_flags: <defaults>
</compile_context>

<pallas_src>
import jax
import jax.numpy as jnp
from jax import lax
from jax.experimental import pallas as pl
from jax.experimental.pallas import tpu as pltpu


def _round_up(x: int, m: int) -> int:
    return ((x + m - 1) // m) * m


def reduce_max_dim0(x: jax.Array, *, tm: int = 1024, tn: int = 2048):
    """Equivalent of torch.max(x, 0) for a 2-D float32 tensor.

    Returns (values, indices) with shapes (N,), (N,).  Indices are int32.
    Columns containing NaN return NaN with the index of the first NaN.
    """
    assert x.ndim == 2, "reduce_max_dim0 expects a rank-2 tensor"
    if x.dtype != jnp.float32:
        x = x.astype(jnp.float32)
    M, N = x.shape

    # ---- tile selection -----------------------------------------------------
    # Sublane tile: multiple of 8, or exactly M (full-dim blocks are always legal).
    if tm >= M:
        tm = M
    else:
        tm = max(8, (tm // 8) * 8)

    # Lane tile: multiple of 128, or exactly N.  If a single tile would cover N
    # but N > 128, split into >= 2 tiles so the "parallel" axis can feed both
    # v7x TensorCores.
    if tn >= N:
        if N > 128:
            tn = _round_up((N + 1) // 2, 128)
            if tn >= N:
                tn = N
        else:
            tn = N
    else:
        tn = max(128, (tn // 128) * 128)

    num_n = pl.cdiv(N, tn)
    num_k = pl.cdiv(M, tm)
    grid = (num_n, num_k)            # (parallel lanes, row-reduction last)

    mask_rows = (M % tm) != 0        # static: emitted only when needed

    # ---- kernel (closure over M / tm / mask_rows) ----------------------------
    def _kernel(x_ref, vals_ref, idx_ref, rows_sc):
        k = pl.program_id(1)

        @pl.when(k == 0)
        def _init():
            rows_sc[...] = lax.broadcasted_iota(jnp.int32, rows_sc.shape, 0)
            vals_ref[...] = jnp.full(vals_ref.shape, -jnp.inf, vals_ref.dtype)
            idx_ref[...] = jnp.zeros(idx_ref.shape, idx_ref.dtype)

        x = x_ref[...]                   # (tm, tn) f32
        row_ids = rows_sc[...]           # cached iota -> vld instead of VALU

        if mask_rows:
            # Last M-tile is a partial boundary block: its out-of-bounds tail is
            # undefined (possibly NaN) and must be masked BEFORE both the max
            # and the NaN/candidate test.
            n_valid = jnp.minimum(M - k * tm, tm)
            x = jnp.where(row_ids < n_valid, x, -jnp.inf)

        tile_vals = jnp.max(x, axis=0, keepdims=True)          # (1, tn); NaN propagates

        # First-occurrence argmax within the tile; NaN positions dominate
        # (torch/numpy semantics: index of the first NaN is returned).
        is_cand = (x == tile_vals) | jnp.isnan(x)
        tile_idx = jnp.min(jnp.where(is_cand, row_ids, jnp.int32(tm)),
                           axis=0, keepdims=True) + k * tm     # global row index

        run_vals = vals_ref[...]
        run_idx = idx_ref[...]
        # Take the new tile iff the running value is not already NaN and the tile
        # value is NaN or strictly greater (strict '>' keeps first occurrence).
        take = jnp.logical_and(
            jnp.logical_not(jnp.isnan(run_vals)),
            jnp.logical_or(jnp.isnan(tile_vals), tile_vals > run_vals))
        vals_ref[...] = jnp.where(take, tile_vals, run_vals)
        idx_ref[...] = jnp.where(take, tile_idx, run_idx)

    # ---- VMEM budget ----------------------------------------------------------
    tile_bytes = tm * tn * 4
    vmem_limit = 2 * tile_bytes        # double-buffered input tile
    vmem_limit += tile_bytes           # cached row-id iota scratch
    vmem_limit += 4 * 2 * tn * 8       # (1, tn) f32 + i32 outputs, double-buffered
    vmem_limit += 2 << 20              # headroom for compiler-internal scratch
    vmem_limit = max(16 << 20, min(60 << 20, vmem_limit))

    cost = pl.CostEstimate(
        flops=3 * M * N,                          # compares + selects (advisory)
        transcendentals=0,
        bytes_accessed=M * N * 4 + N * 8)         # read input + write vals/idx

    vals, idx = pl.pallas_call(
        _kernel,
        out_shape=(
            jax.ShapeDtypeStruct((1, N), jnp.float32),
            jax.ShapeDtypeStruct((1, N), jnp.int32),
        ),
        grid_spec=pltpu.PrefetchScalarGridSpec(
            num_scalar_prefetch=0,
            grid=grid,
            in_specs=[pl.BlockSpec((tm, tn), lambda j, k: (k, j))],
            out_specs=[
                pl.BlockSpec((1, tn), lambda j, k: (0, j)),
                pl.BlockSpec((1, tn), lambda j, k: (0, j)),
            ],
            scratch_shapes=[
                pltpu.VMEM((tm, tn), jnp.int32),   # cached row-id iota
            ],
        ),
        compiler_params=pltpu.CompilerParams(
            dimension_semantics=("parallel", "arbitrary"),
            vmem_limit_bytes=vmem_limit,
        ),
        cost_estimate=cost,
    )(x)

    return vals[0], idx[0]


if __name__ == "__main__":
    key = jax.random.PRNGKey(0)
    k1, k2, k3 = jax.random.split(key, 3)

    # Case 1: the canonical small shape for ReduceMax_F32_R2_d0 (rank-2 F32).
    M, N = 8, 128
    x = jax.random.normal(k1, (M, N), dtype=jnp.float32)
    vals, idx = reduce_max_dim0(x)
    jax.block_until_ready((vals, idx))
    assert vals.shape == (N,) and idx.shape == (N,)
    assert jnp.allclose(vals, jnp.max(x, axis=0)), "values mismatch (case 1)"
    assert jnp.array_equal(idx, jnp.argmax(x, axis=0).astype(jnp.int32)), \
        "indices mismatch (case 1)"

    # Case 2: ragged shape + tiny tiles -> exercises the in-kernel row mask
    # (M % tm != 0), multiple lane tiles, and NaN parity (NaN value + first-NaN
    # index), all without any host-side padding.
    M2, N2 = 37, 300
    x2 = jax.random.normal(k2, (M2, N2), dtype=jnp.float32)
    x2 = x2.at[19, 7].set(jnp.nan)
    vals2, idx2 = reduce_max_dim0(x2, tm=16, tn=128)
    jax.block_until_ready((vals2, idx2))
    ref_vals2 = jnp.max(x2, axis=0)                           # NaN propagates
    ref_idx2 = jnp.argmax(x2, axis=0).astype(jnp.int32)
    ref_idx2 = ref_idx2.at[7].set(19)                         # first-NaN index
    assert jnp.allclose(vals2, ref_vals2, equal_nan=True), "values mismatch (case 2)"
    assert bool(jnp.isnan(vals2[7])), "NaN did not propagate (case 2)"
    assert jnp.array_equal(idx2, ref_idx2), "indices mismatch (case 2)"

    # Case 3: default tiles, non-128-aligned N > 128 -> forced >= 2 parallel lane
    # tiles (keeps both v7x TensorCores busy) with a partial boundary lane tile
    # and a single full-M reduction tile (M not a multiple of 8, full-dim block).
    M3, N3 = 130, 384
    x3 = jax.random.normal(k3, (M3, N3), dtype=jnp.float32)
    vals3, idx3 = reduce_max_dim0(x3)
    jax.block_until_ready((vals3, idx3))
    assert jnp.allclose(vals3, jnp.max(x3, axis=0)), "values mismatch (case 3)"
    assert jnp.array_equal(idx3, jnp.argmax(x3, axis=0).astype(jnp.int32)), \
        "indices mismatch (case 3)"

    print("KERNEL_OK")
</pallas_src>

<mosaic_0001>
module attributes {stable_mosaic.version = 11 : i64} {
  func.func @_kernel(%arg0: i32, %arg1: i32, %arg2: memref<8x128xf32, #tpu.memory_space<vmem>>, %arg3: memref<1x128xf32, #tpu.memory_space<vmem>>, %arg4: memref<1x128xi32, #tpu.memory_space<vmem>>, %arg5: memref<8x128xi32, #tpu.memory_space<vmem>>) attributes {dimension_semantics = [#tpu.dimension_semantics<parallel>, #tpu.dimension_semantics<arbitrary>], iteration_bounds = array<i64: 1, 1>, scalar_prefetch = 0 : i64, scratch_operands = 1 : i64, tpu.core_type = #tpu.core_type<tc>, window_params = [{transform_indices = @transform_0, window_bounds = array<i64: 8, 128>}, {transform_indices = @transform_1, window_bounds = array<i64: 1, 128>}, {transform_indices = @transform_2, window_bounds = array<i64: 1, 128>}]} {
    %c0_i32 = arith.constant 0 : i32
    %0 = arith.cmpi eq, %arg1, %c0_i32 : i32
    %1 = arith.extui %0 : i1 to i32
    %c0_i32_0 = arith.constant 0 : i32
    %2 = arith.cmpi ne, %1, %c0_i32_0 : i32
    scf.if %2 {
      %30 = tpu.iota {dimensions = array<i32: 0>} : vector<8x128xi32>
      %c0_15 = arith.constant 0 : index
      %c0_16 = arith.constant 0 : index
      %31 = vector.load %arg5[%c0_15, %c0_16] : memref<8x128xi32, #tpu.memory_space<vmem>>, vector<8x128xi32>
      tpu.vector_store %arg5[%c0_15, %c0_16], %30 {strides = array<i32>} : memref<8x128xi32, #tpu.memory_space<vmem>>, vector<8x128xi32>,
      %cst_17 = arith.constant 0xFF800000 : f32
      %32 = vector.broadcast %cst_17 : f32 to vector<1x128xf32>
      %c0_18 = arith.constant 0 : index
      %c0_19 = arith.constant 0 : index
      %33 = vector.load %arg3[%c0_18, %c0_19] : memref<1x128xf32, #tpu.memory_space<vmem>>, vector<1x128xf32>
      tpu.vector_store %arg3[%c0_18, %c0_19], %32 {strides = array<i32>} : memref<1x128xf32, #tpu.memory_space<vmem>>, vector<1x128xf32>,
      %c0_i32_20 = arith.constant 0 : i32
      %34 = vector.broadcast %c0_i32_20 : i32 to vector<1x128xi32>
      %c0_21 = arith.constant 0 : index
      %c0_22 = arith.constant 0 : index
      %35 = vector.load %arg4[%c0_21, %c0_22] : memref<1x128xi32, #tpu.memory_space<vmem>>, vector<1x128xi32>
      tpu.vector_store %arg4[%c0_21, %c0_22], %34 {strides = array<i32>} : memref<1x128xi32, #tpu.memory_space<vmem>>, vector<1x128xi32>,
    } else {
    }
    %c0 = arith.constant 0 : index
    %c0_1 = arith.constant 0 : index
    %3 = vector.load %arg2[%c0, %c0_1] : memref<8x128xf32, #tpu.memory_space<vmem>>, vector<8x128xf32>
    %c0_2 = arith.constant 0 : index
    %c0_3 = arith.constant 0 : index
    %4 = vector.load %arg5[%c0_2, %c0_3] : memref<8x128xi32, #tpu.memory_space<vmem>>, vector<8x128xi32>
    %cst = arith.constant dense<0xFF800000> : vector<128xf32>
    %5 = vector.multi_reduction <maximumf>, %3, %cst [0] : vector<8x128xf32> to vector<128xf32>
    %6 = vector.shape_cast %5 : vector<128xf32> to vector<1x128xf32>
    %7 = vector.broadcast %6 : vector<1x128xf32> to vector<8x128xf32>
    %8 = arith.cmpf oeq, %3, %7 : vector<8x128xf32>
    %9 = arith.cmpf one, %3, %3 : vector<8x128xf32>
    %10 = arith.ori %8, %9 : vector<8x128xi1>
    %c8_i32 = arith.constant 8 : i32
    %11 = vector.broadcast %c8_i32 : i32 to vector<8x128xi32>
    %12 = arith.select %10, %4, %11 : vector<8x128xi1>, vector<8x128xi32>
    %cst_4 = arith.constant dense<2147483647> : vector<128xi32>
    %13 = vector.multi_reduction <minsi>, %12, %cst_4 [0] : vector<8x128xi32> to vector<128xi32>
    %14 = vector.shape_cast %13 : vector<128xi32> to vector<1x128xi32>
    %c8_i32_5 = arith.constant 8 : i32
    %15 = arith.muli %arg1, %c8_i32_5 : i32
    %16 = vector.broadcast %15 : i32 to vector<1x128xi32>
    %17 = arith.addi %14, %16 : vector<1x128xi32>
    %c0_6 = arith.constant 0 : index
    %c0_7 = arith.constant 0 : index
    %18 = vector.load %arg3[%c0_6, %c0_7] : memref<1x128xf32, #tpu.memory_space<vmem>>, vector<1x128xf32>
    %c0_8 = arith.constant 0 : index
    %c0_9 = arith.constant 0 : index
    %19 = vector.load %arg4[%c0_8, %c0_9] : memref<1x128xi32, #tpu.memory_space<vmem>>, vector<1x128xi32>
    %20 = arith.cmpf one, %18, %18 : vector<1x128xf32>
    %cst_10 = arith.constant dense<true> : vector<1x128xi1>
    %21 = arith.xori %20, %cst_10 : vector<1x128xi1>
    %22 = arith.cmpf one, %6, %6 : vector<1x128xf32>
    %23 = arith.cmpf ogt, %6, %18 : vector<1x128xf32>
    %24 = arith.ori %22, %23 : vector<1x128xi1>
    %25 = arith.andi %21, %24 : vector<1x128xi1>
    %26 = arith.select %25, %6, %18 : vector<1x128xi1>, vector<1x128xf32>
    %c0_11 = arith.constant 0 : index
    %c0_12 = arith.constant 0 : index
    %27 = vector.load %arg3[%c0_11, %c0_12] : memref<1x128xf32, #tpu.memory_space<vmem>>, vector<1x128xf32>
    tpu.vector_store %arg3[%c0_11, %c0_12], %26 {strides = array<i32>} : memref<1x128xf32, #tpu.memory_space<vmem>>, vector<1x128xf32>,
    %28 = arith.select %25, %17, %19 : vector<1x128xi1>, vector<1x128xi32>
    %c0_13 = arith.constant 0 : index
    %c0_14 = arith.constant 0 : index
    %29 = vector.load %arg4[%c0_13, %c0_14] : memref<1x128xi32, #tpu.memory_space<vmem>>, vector<1x128xi32>
    tpu.vector_store %arg4[%c0_13, %c0_14], %28 {strides = array<i32>} : memref<1x128xi32, #tpu.memory_space<vmem>>, vector<1x128xi32>,
    return
  }
  func.func @transform_0(%arg0: i32, %arg1: i32) -> (i32, i32) {
    %c0_i32 = arith.constant 0 : i32
    return %arg1, %arg0 : i32, i32
  }
  func.func @transform_1(%arg0: i32, %arg1: i32) -> (i32, i32) {
    %c0_i32 = arith.constant 0 : i32
    %c0_i32_0 = arith.constant 0 : i32
    return %c0_i32, %arg0 : i32, i32
  }
  func.func @transform_2(%arg0: i32, %arg1: i32) -> (i32, i32) {
    %c0_i32 = arith.constant 0 : i32
    %c0_i32_0 = arith.constant 0 : i32
    return %c0_i32, %arg0 : i32, i32
  }
}

</mosaic_0001>

<bundles_post_ra>
// kernel: tpu_custom_call.1
= control target key start
LH: loop header
LB: loop body
LE: loop exit
PB: predicated region body
PF: predicated region fallthrough
CT: control target
= control target key end

     0   :  { %8 = vsyncpa [#allocation4], 0  ;;  %s255_s0 = inlined_call_operand.hbm [shape: f32[8,128], index: 0, kind: input, shape index: {}]   ;;  %s256_s1 = inlined_call_operand.hbm [shape: f32[1,128], index: 1, kind: output, shape index: {0}]   ;;  %s257_s2 = inlined_call_operand.hbm [shape: s32[1,128], index: 2, kind: output, shape index: {1}]  }
   0x1   :  { %9 = vsyncpa [#allocation5], 0 }
   0x2   :  { %10 = vsyncpa [#allocation8], 0  ;;  %s176_s9 = smov [#allocation3]   ;;  %s104_s13 = scalar_lea.hbm %s255_s0, 128 }
   0x3   :  { %s17_s10 = sshll.u32 %s176_s9, 4  ;;  %p105_p0 = scmp.ne.s32.totalorder %s255_s0, %s104_s13  ;;  %s18_s10 = int_to_ptr.vmem [resolvable:$true] %s17_s10 }
   0x4   :  { %p108_p1 = scmp.lt.u32.totalorder %s104_s13, %s255_s0 }
   0x6   :  { %p110_p2 = pnand %p108_p1, %p105_p0 }
   0x8   :  { %113 = shalt.err (!%p110_p2)
}
   0x9   :  { %s114_s18 = scalar_lea.vmem %s18_s10, 128  ;;  %p119_p4 = scmp.lt.s32.totalorder %s18_s10, %s18_s10 }
   0xa   :  { %p115_p3 = scmp.ne.s32.totalorder %s18_s10, %s114_s18  ;;  %p120_p5 = scmp.lt.s32.totalorder %s114_s18, %s114_s18 }
   0xc   :  { %p121_p6 = por %p120_p5, %p119_p4 }
   0xe   :  { %p122_p7 = pnand %p121_p6, %p115_p3 }
  0x10   :  { %125 = shalt.err (!%p122_p7)
}
  0x11   :  { %20 = dma.hbm_to_vmem [thread:$0]  %s255_s0, 128, %s18_s10, [#allocation4]  }
  0x12   :  { %170 = dma.done.wait [#allocation4], 128  }
  0x13   :  { %171 = vsyncadd [#allocation4], 4294967168  ;;  %v177_v0 = vmov -inf   ;;  %v178_v1 = vmov 0   ;;  %v33_v2 = vld [vmem:[#allocation3] sm:$0xff]  ;;  %v28_v8 = vlaneseq  ;;  %vm179_vm1 = vmmov 1  }
  0x14   :  { %31 = vst [vmem:[#allocation6] sm:$0x1] %v177_v0  ;;  %32 = vst [vmem:[#allocation7] sm:$0x1] %v178_v1  ;;  %v35_v3 = vrot.slane %v33_v2, 4  ;;  %s180_s0 = smov [#allocation6]   ;;  %vm42_vm6 = vcmp.ne.f32.partialorder %v33_v2, %v33_v2 }
  0x15   :  { %v29_v12 = vshrl.u32 %v28_v8, 7  ;;  %s75_s21 = sshll.u32 %s180_s0, 4  ;;  %s76_s21 = int_to_ptr.vmem [resolvable:$true] %s75_s21 }
  0x16   :  { %v36_v4 = vmax.f32 %v33_v2, %v35_v3  ;;  %s126_s22 = scalar_lea.vmem %s76_s21, 16  ;;  %s130_s23 = scalar_lea.vmem %s76_s21, 32 }
  0x17   :  { %p127_p8 = scmp.ne.s32.totalorder %s76_s21, %s126_s22  ;;  %p131_p9 = scmp.lt.s32.totalorder %s76_s21, %s76_s21 }
  0x18   :  { %v37_v5 = vrot.slane %v36_v4, 2  ;;  %p132_p10 = scmp.lt.s32.totalorder %s130_s23, %s126_s22 }
  0x1a   :  { %v38_v7 = vmax.f32 %v36_v4, %v37_v5  ;;  %p133_p11 = por %p132_p10, %p131_p9 }
  0x1b   :  { %v57_v6 = vld [vmem:[#allocation6] sm:$0x1] }
  0x1c   :  { %v39_v9 = vrot.slane %v38_v7, 1  ;;  %vm59_vm0 = vcmp.ne.f32.partialorder %v57_v6, %v57_v6  ;;  %p134_p12 = pnand %p133_p11, %p127_p8 }
  0x1d   :  { %vm209_vm2 = vmxor %vm59_vm0, %vm179_vm1 }
  0x1e   :  { %v40_v10 = vmax.f32 %v38_v7, %v39_v9 }
  0x20   :  { %vm61_vm3 = vcmp.ne.f32.partialorder %v40_v10, %v40_v10  ;;  %vm62_vm4 = vcmp.gt.f32.partialorder %v40_v10, %v57_v6  ;;  %vm41_vm5 = vcmp.eq.f32.partialorder %v33_v2, %v40_v10 }
  0x21   :  { %vm213_vm7 = vmor %vm61_vm3, %vm62_vm4 }
  0x22   :  { %vm64_vm8 = vmand %vm209_vm2, %vm213_vm7 }
  0x23   :  { %v65_v14 = vsel %vm64_vm8, %v40_v10, %v57_v6  ;;  %vm43_vm9 = vmor %vm41_vm5, %vm42_vm6 }
  0x24   :  { %66 = vst [vmem:[#allocation6] sm:$0x1] %v65_v14  ;;  %v44_v15 = vsel %vm43_vm9, %v29_v12, 8 }
  0x25   :  { %v45_v16 = vrot.slane %v44_v15, 4 }
  0x26   :  { %137 = shalt.err (!%p134_p12)
}
  0x27   :  { %s138_s26 = scalar_lea.hbm %s256_s1, 16 }
  0x28   :  { %p139_p13 = scmp.ne.s32.totalorder %s256_s1, %s138_s26  ;;  %p142_p0 = scmp.lt.u32.totalorder %s138_s26, %s256_s1 }
  0x2a   :  { %p144_p1 = pnand %p142_p0, %p139_p13 }
  0x2c   :  { %147 = shalt.err (!%p144_p1)
}
  0x2d   :  { %78 = dma.vmem_to_hbm [thread:$0]  %s76_s21, 16, %s256_s1, [#allocation5]   ;;  %vm46_vm10 = vcmp.lt.s32.totalorder %v44_v15, %v45_v16  ;;  %v58_v21 = vld [vmem:[#allocation7] sm:$0x1] }
  0x2e   :  { %v47_v17 = vsel %vm46_vm10, %v44_v15, %v45_v16  ;;  %s181_s5 = smov [#allocation7]  }
  0x2f   :  { %v48_v18 = vrot.slane %v47_v17, 2  ;;  %s85_s6 = sshll.u32 %s181_s5, 4  ;;  %s86_s6 = int_to_ptr.vmem [resolvable:$true] %s85_s6 }
  0x30   :  { %s148_s1 = scalar_lea.vmem %s86_s6, 16  ;;  %s152_s7 = scalar_lea.vmem %s86_s6, 32 }
  0x31   :  { %vm49_vm11 = vcmp.lt.s32.totalorder %v47_v17, %v48_v18  ;;  %p149_p2 = scmp.ne.s32.totalorder %s86_s6, %s148_s1  ;;  %p153_p3 = scmp.lt.s32.totalorder %s86_s6, %s86_s6 }
  0x32   :  { %v50_v19 = vsel %vm49_vm11, %v47_v17, %v48_v18  ;;  %p154_p4 = scmp.lt.s32.totalorder %s152_s7, %s148_s1 }
  0x33   :  { %v51_v20 = vrot.slane %v50_v19, 1 }
  0x34   :  { %p155_p5 = por %p154_p4, %p153_p3 }
  0x35   :  { %vm52_vm12 = vcmp.lt.s32.totalorder %v50_v19, %v51_v20 }
  0x36   :  { %v53_v22 = vsel %vm52_vm12, %v50_v19, %v51_v20  ;;  %p156_p6 = pnand %p155_p5, %p149_p2 }
  0x37   :  { %v67_v23 = vsel %vm64_vm8, %v53_v22, %v58_v21 }
  0x38   :  { %68 = vst [vmem:[#allocation7] sm:$0x1] %v67_v23 }
  0x39   :  { %159 = shalt.err (!%p156_p6)
}
  0x3a   :  { %s160_s10 = scalar_lea.hbm %s257_s2, 16 }
  0x3b   :  { %p161_p7 = scmp.ne.s32.totalorder %s257_s2, %s160_s10  ;;  %p164_p8 = scmp.lt.u32.totalorder %s160_s10, %s257_s2 }
  0x3d   :  { %p166_p9 = pnand %p164_p8, %p161_p7 }
  0x3f   :  { %169 = shalt.err (!%p166_p9)
}
  0x40   :  { %88 = dma.vmem_to_hbm [thread:$0]  %s86_s6, 16, %s257_s2, [#allocation8]  }
  0x41   :  { %172 = dma.done.wait [#allocation5], 16  }
  0x42   :  { %173 = vsyncadd [#allocation5], 4294967280 }
  0x43   :  { %174 = dma.done.wait [#allocation8], 16  }
  0x44   :  { %175 = vsyncadd [#allocation8], 4294967280 }
  0x45   :  { %95 = vsyncpa [#allocation4], 1 }
  0x46   :  { %96 = vsyncpa [#allocation5], 1 }
  0x47   :  { %97 = vsyncpa [#allocation8], 1 }

</bundles_post_ra>
